<compile_context>
chip_gen: v7x
topology: tpu7x:2x2x1
jax: 0.10.0
libtpu: 0.0.40
codegen_flags: <defaults>
</compile_context>

<pallas_src>
import jax
import jax.numpy as jnp
from jax.experimental import pallas as pl
from jax.experimental.pallas import tpu as pltpu


def _round_up(v, m):
    return ((v + m - 1) // m) * m


def encoder_kernel(x_ref, w1_ref, b1_ref, wh_ref, bh_ref, out_ref):
    # Layer 1: hidden = relu(x @ W1 + b1). Cast x to the weight compute dtype
    # (no-op for f32, bf16 MXU fast path when weights were prepared as bf16);
    # accumulate in f32, bias-add/ReLU in f32.
    x = x_ref[...].astype(w1_ref.dtype)
    h = jnp.dot(x, w1_ref[...], preferred_element_type=jnp.float32) + b1_ref[...]
    h = jnp.maximum(h, 0.0)
    # Fused mu|var head: one matmul, one lane-dense store.
    h = h.astype(wh_ref.dtype)
    out_ref[...] = (jnp.dot(h, wh_ref[...], preferred_element_type=jnp.float32)
                    + bh_ref[...]).astype(out_ref.dtype)


def prepare_encoder_params(w1, b1, wmu, bmu, wvar, bvar,
                           compute_dtype=jnp.float32):
    """One-time weight fusion + lane padding. Call once at init and reuse.

    Weights are stored as [in, out] (transpose of PyTorch's [out, in]); biases
    as [1, out]. Zero padding of the hidden (H) and fused-head (N) dims is
    mathematically inert. The contraction dim of layer 1 (input_dim) is left
    unpadded so x never needs a feature-pad copy.
    """
    input_dim, hidden_dim = w1.shape
    z_dim = wmu.shape[1]
    H = _round_up(hidden_dim, 128)     # hidden / head contraction dim
    N = _round_up(2 * z_dim, 128)      # fused head output width (lane-dense)
    # (On v6e/v7x with real-sized dims, rounding H/N to 256 fills the MXU
    #  better; 128 is kept here since it is optimal on v5e and the toy dims.)

    wh = jnp.concatenate([wmu, wvar], axis=1)   # [hidden, 2*z]
    bh = jnp.concatenate([bmu, bvar], axis=1)   # [1, 2*z]

    w1p = (jnp.zeros((input_dim, H), compute_dtype)
           .at[:, :hidden_dim].set(w1.astype(compute_dtype)))
    b1p = (jnp.zeros((1, H), jnp.float32)
           .at[:, :hidden_dim].set(b1.astype(jnp.float32)))
    whp = (jnp.zeros((H, N), compute_dtype)
           .at[:hidden_dim, :2 * z_dim].set(wh.astype(compute_dtype)))
    bhp = (jnp.zeros((1, N), jnp.float32)
           .at[:, :2 * z_dim].set(bh.astype(jnp.float32)))

    return {"w1": w1p, "b1": b1p, "wh": whp, "bh": bhp,
            "input_dim": input_dim, "z_dim": z_dim, "H": H, "N": N}


def encoder_forward(x, params, tile_b=None):
    """x: [B, input_dim] (f32). `params` from prepare_encoder_params."""
    B, input_dim = x.shape
    assert input_dim == params["input_dim"]
    H, N, z_dim = params["H"], params["N"], params["z_dim"]
    w1p, b1p, whp, bhp = params["w1"], params["b1"], params["wh"], params["bh"]

    # ---- batch tiling ------------------------------------------------------
    Bp8 = _round_up(B, 8)
    if tile_b is None:
        # >= 2 grid steps whenever possible (keeps both v7x TensorCores busy
        # under dimension_semantics=("parallel",)), tiles capped near 512 rows
        # to amortize per-step overhead while staying far under VMEM.
        n_tiles = max(2, pl.cdiv(Bp8, 512)) if Bp8 >= 16 else 1
        tile_b = _round_up(pl.cdiv(Bp8, n_tiles), 8)
    tile_b = max(8, _round_up(tile_b, 8))          # f32 sublane alignment
    Bp = _round_up(B, tile_b)                      # <= tile_b - 1 pad rows

    if Bp == B:
        xp = x                                     # no padding copy at all
    else:
        xp = jnp.zeros((Bp, input_dim), x.dtype).at[:B].set(x)

    grid = (Bp // tile_b,)

    # ---- scheduling hints ---------------------------------------------------
    flops = 2 * Bp * (input_dim * H + H * N)
    bytes_accessed = int(
        Bp * input_dim * xp.dtype.itemsize
        + w1p.size * w1p.dtype.itemsize + whp.size * whp.dtype.itemsize
        + (b1p.size + bhp.size) * 4
        + Bp * N * 4)
    cost = pl.CostEstimate(flops=int(flops), transcendentals=0,
                           bytes_accessed=bytes_accessed)

    # VMEM budget: weights (x2 for default double-buffering, conservative)
    # + 2x double-buffered x/out tiles; never below the 32 MiB default.
    vmem_est = (2 * (w1p.size * w1p.dtype.itemsize
                     + whp.size * whp.dtype.itemsize
                     + (b1p.size + bhp.size) * 4)
                + 2 * (tile_b * input_dim * xp.dtype.itemsize + tile_b * N * 4))
    vmem_limit = int(min(128 << 20, max(32 << 20, int(vmem_est * 1.5))))

    out = pl.pallas_call(
        encoder_kernel,
        out_shape=jax.ShapeDtypeStruct((Bp, N), jnp.float32),
        grid_spec=pltpu.PrefetchScalarGridSpec(
            num_scalar_prefetch=0,
            grid=grid,
            in_specs=[
                # x tile marches along the batch axis; feature dim unpadded
                # (block dim == full array dim satisfies the (8,128) rule).
                pl.BlockSpec((tile_b, input_dim), lambda i: (i, 0)),
                # Weights / biases: constant block index -> VMEM-resident
                # across all grid steps (no re-DMA per batch tile).
                pl.BlockSpec(w1p.shape, lambda i: (0, 0)),
                pl.BlockSpec(b1p.shape, lambda i: (0, 0)),
                pl.BlockSpec(whp.shape, lambda i: (0, 0)),
                pl.BlockSpec(bhp.shape, lambda i: (0, 0)),
            ],
            out_specs=pl.BlockSpec((tile_b, N), lambda i: (i, 0)),
        ),
        compiler_params=pltpu.CompilerParams(
            dimension_semantics=("parallel",),     # shards across TCs on v7x
            vmem_limit_bytes=vmem_limit),
        cost_estimate=cost,
    )(xp, w1p, b1p, whp, bhp)

    # Single slice over the padded output, then split mu | var.
    zs = out[:B, :2 * z_dim]
    return zs[:, :z_dim], zs[:, z_dim:]


def init_linear(key, in_features, out_features):
    # Deterministic init mimicking nn.Linear's uniform(-1/sqrt(in), 1/sqrt(in)).
    kw, kb = jax.random.split(key)
    bound = 1.0 / jnp.sqrt(jnp.float32(in_features))
    # Stored as [in, out] (transpose of PyTorch's [out, in]) so kernel does x @ W.
    w = jax.random.uniform(kw, (in_features, out_features), jnp.float32,
                           minval=-bound, maxval=bound)
    b = jax.random.uniform(kb, (1, out_features), jnp.float32,
                           minval=-bound, maxval=bound)
    return w, b


if __name__ == "__main__":
    # Small shapes consistent with the module's forward: x is [batch, input_dim].
    # batch=20 with tile_b=8 exercises batch padding and a multi-step grid.
    batch, input_dim, hidden_dim, z_dim = 20, 64, 32, 16

    key = jax.random.PRNGKey(0)
    kx, k1, k2, k3 = jax.random.split(key, 4)

    x = jax.random.normal(kx, (batch, input_dim), jnp.float32)
    w1, b1 = init_linear(k1, input_dim, hidden_dim)
    wmu, bmu = init_linear(k2, hidden_dim, z_dim)
    wvar, bvar = init_linear(k3, hidden_dim, z_dim)

    # Pure-JAX reference.
    h_ref = jnp.maximum(x @ w1 + b1, 0.0)
    mu_ref = h_ref @ wmu + bmu
    var_ref = h_ref @ wvar + bvar

    # ---- f32 path (default; exact to 1e-5) ---------------------------------
    params_f32 = prepare_encoder_params(w1, b1, wmu, bmu, wvar, bvar)
    z_mu, z_var = encoder_forward(x, params_f32, tile_b=8)
    jax.block_until_ready((z_mu, z_var))
    assert z_mu.shape == (batch, z_dim) and z_var.shape == (batch, z_dim)
    assert jnp.allclose(z_mu, mu_ref, atol=1e-5, rtol=1e-5)
    assert jnp.allclose(z_var, var_ref, atol=1e-5, rtol=1e-5)

    # ---- bf16 MXU path (v6e/v7x fast path; f32 accumulation) ---------------
    params_bf16 = prepare_encoder_params(w1, b1, wmu, bmu, wvar, bvar,
                                         compute_dtype=jnp.bfloat16)
    z_mu_bf, z_var_bf = encoder_forward(x, params_bf16)   # auto tile_b
    jax.block_until_ready((z_mu_bf, z_var_bf))
    assert jnp.allclose(z_mu_bf, mu_ref, atol=5e-2, rtol=5e-2)
    assert jnp.allclose(z_var_bf, var_ref, atol=5e-2, rtol=5e-2)

    print("KERNEL_OK")
</pallas_src>

<mosaic_0001>
module attributes {stable_mosaic.version = 11 : i64} {
  func.func @encoder_kernel(%arg0: i32, %arg1: memref<8x64xf32, #tpu.memory_space<vmem>>, %arg2: memref<64x128xf32, #tpu.memory_space<vmem>>, %arg3: memref<1x128xf32, #tpu.memory_space<vmem>>, %arg4: memref<128x128xf32, #tpu.memory_space<vmem>>, %arg5: memref<1x128xf32, #tpu.memory_space<vmem>>, %arg6: memref<8x128xf32, #tpu.memory_space<vmem>>) attributes {dimension_semantics = [#tpu.dimension_semantics<parallel>], iteration_bounds = array<i64: 3>, scalar_prefetch = 0 : i64, scratch_operands = 0 : i64, tpu.core_type = #tpu.core_type<tc>, window_params = [{transform_indices = @transform_0, window_bounds = array<i64: 8, 64>}, {pipeline_mode = #tpu.pipeline_mode<synchronous>, transform_indices = @transform_1, window_bounds = array<i64: 64, 128>}, {pipeline_mode = #tpu.pipeline_mode<synchronous>, transform_indices = @transform_2, window_bounds = array<i64: 1, 128>}, {pipeline_mode = #tpu.pipeline_mode<synchronous>, transform_indices = @transform_3, window_bounds = array<i64: 128, 128>}, {pipeline_mode = #tpu.pipeline_mode<synchronous>, transform_indices = @transform_4, window_bounds = array<i64: 1, 128>}, {transform_indices = @transform_5, window_bounds = array<i64: 8, 128>}]} {
    %c0 = arith.constant 0 : index
    %c0_0 = arith.constant 0 : index
    %0 = vector.load %arg1[%c0, %c0_0] : memref<8x64xf32, #tpu.memory_space<vmem>>, vector<8x64xf32>
    %c0_1 = arith.constant 0 : index
    %c0_2 = arith.constant 0 : index
    %1 = vector.load %arg2[%c0_1, %c0_2] : memref<64x128xf32, #tpu.memory_space<vmem>>, vector<64x128xf32>
    %cst = arith.constant dense<0.000000e+00> : vector<8x128xf32>
    %2 = tpu.matmul %0, %1, %cst {dimension_numbers = #tpu.dot_dimension_numbers<[1], [0], [0], [1], [0, 0, 1, 1], [], []>} : vector<8x64xf32>, vector<64x128xf32>, vector<8x128xf32> -> vector<8x128xf32>
    %c0_3 = arith.constant 0 : index
    %c0_4 = arith.constant 0 : index
    %3 = vector.load %arg3[%c0_3, %c0_4] : memref<1x128xf32, #tpu.memory_space<vmem>>, vector<1x128xf32>
    %4 = vector.broadcast %3 : vector<1x128xf32> to vector<8x128xf32>
    %5 = arith.addf %2, %4 : vector<8x128xf32>
    %cst_5 = arith.constant 0.000000e+00 : f32
    %6 = vector.broadcast %cst_5 : f32 to vector<8x128xf32>
    %7 = arith.maximumf %5, %6 : vector<8x128xf32>
    %c0_6 = arith.constant 0 : index
    %c0_7 = arith.constant 0 : index
    %8 = vector.load %arg4[%c0_6, %c0_7] : memref<128x128xf32, #tpu.memory_space<vmem>>, vector<128x128xf32>
    %cst_8 = arith.constant dense<0.000000e+00> : vector<8x128xf32>
    %9 = tpu.matmul %7, %8, %cst_8 {dimension_numbers = #tpu.dot_dimension_numbers<[1], [0], [0], [1], [0, 0, 1, 1], [], []>} : vector<8x128xf32>, vector<128x128xf32>, vector<8x128xf32> -> vector<8x128xf32>
    %c0_9 = arith.constant 0 : index
    %c0_10 = arith.constant 0 : index
    %10 = vector.load %arg5[%c0_9, %c0_10] : memref<1x128xf32, #tpu.memory_space<vmem>>, vector<1x128xf32>
    %11 = vector.broadcast %10 : vector<1x128xf32> to vector<8x128xf32>
    %12 = arith.addf %9, %11 : vector<8x128xf32>
    %c0_11 = arith.constant 0 : index
    %c0_12 = arith.constant 0 : index
    %13 = vector.load %arg6[%c0_11, %c0_12] : memref<8x128xf32, #tpu.memory_space<vmem>>, vector<8x128xf32>
    tpu.vector_store %arg6[%c0_11, %c0_12], %12 {strides = array<i32>} : memref<8x128xf32, #tpu.memory_space<vmem>>, vector<8x128xf32>,
    return
  }
  func.func @transform_0(%arg0: i32) -> (i32, i32) {
    %c0_i32 = arith.constant 0 : i32
    %c0_i32_0 = arith.constant 0 : i32
    return %arg0, %c0_i32 : i32, i32
  }
  func.func @transform_1(%arg0: i32) -> (i32, i32) {
    %c0_i32 = arith.constant 0 : i32
    %c0_i32_0 = arith.constant 0 : i32
    %c0_i32_1 = arith.constant 0 : i32
    return %c0_i32, %c0_i32_0 : i32, i32
  }
  func.func @transform_2(%arg0: i32) -> (i32, i32) {
    %c0_i32 = arith.constant 0 : i32
    %c0_i32_0 = arith.constant 0 : i32
    %c0_i32_1 = arith.constant 0 : i32
    return %c0_i32, %c0_i32_0 : i32, i32
  }
  func.func @transform_3(%arg0: i32) -> (i32, i32) {
    %c0_i32 = arith.constant 0 : i32
    %c0_i32_0 = arith.constant 0 : i32
    %c0_i32_1 = arith.constant 0 : i32
    return %c0_i32, %c0_i32_0 : i32, i32
  }
  func.func @transform_4(%arg0: i32) -> (i32, i32) {
    %c0_i32 = arith.constant 0 : i32
    %c0_i32_0 = arith.constant 0 : i32
    %c0_i32_1 = arith.constant 0 : i32
    return %c0_i32, %c0_i32_0 : i32, i32
  }
  func.func @transform_5(%arg0: i32) -> (i32, i32) {
    %c0_i32 = arith.constant 0 : i32
    %c0_i32_0 = arith.constant 0 : i32
    return %arg0, %c0_i32 : i32, i32
  }
}

</mosaic_0001>

<bundles_post_ra>
// kernel: tpu_custom_call.1
= control target key start
LH: loop header
LB: loop body
LE: loop exit
PB: predicated region body
PF: predicated region fallthrough
CT: control target
= control target key end

     0   :  { %10 = vsyncpa [#allocation3], 0  ;;  %s1194_s0 = inlined_call_operand.hbm [shape: f32[24,64], index: 0, kind: input, shape index: {}]   ;;  %s1195_s1 = inlined_call_operand.hbm [shape: f32[64,128], index: 1, kind: input, shape index: {}]   ;;  %s1196_s2 = inlined_call_operand.vmem [shape: f32[1,128], index: 2, kind: input, shape index: {}]   ;;  %s1197_s3 = inlined_call_operand.hbm [shape: f32[128,128], index: 3, kind: input, shape index: {}]   ;;  %s1198_s4 = inlined_call_operand.vmem [shape: f32[1,128], index: 4, kind: input, shape index: {}]   ;;  %s1199_s5 = inlined_call_operand.hbm [shape: f32[24,128], index: 5, kind: output, shape index: {}]  }
   0x1   :  { %12 = vsyncpa [#allocation3 + $0x1], 0 }
   0x2   :  { %13 = vsyncpa [#allocation6], 0 }
   0x3   :  { %14 = vsyncpa [#allocation4], 0 }
   0x4   :  { %16 = vsyncpa [#allocation4 + $0x1], 0  ;;  %s961_s18 = smov 0   ;;  %s963_s19 = smov 0  }
   0x5   :  { %s965_s20 = smov 0   ;;  %s967_s21 = smov 0  }
   0x6 LB: > { %s982_s22 = sadd.s32 4294967295, %s920_s21   ;;  %s557_s23 = sadd.s32 4294967294, %s920_s21   ;;  %s920_s21 = sphi %s967_s21, %s1218_s21   ;;  %s916_s20 = sphi %s965_s20, %s1217_s20   ;;  %s912_s19 = sphi %s963_s19, %s1216_s19   ;;  %s908_s18 = sphi %s961_s18, %s1215_s18  }
   0x7   : > { %p42_p0 = scmp.ne.s32.totalorder %s912_s19, %s908_s18  ;;  %p1200_p1 = scmp.eq.s32.totalorder %s982_s22, 0 }
   0x8   : > { %p156_p3 = scmp.eq.s32.totalorder %s557_s23, 2  ;;  %p558_p5 = scmp.ge.s32.totalorder %s920_s21, 1 }
   0x9   : > { %p991_p4 = por %p1200_p1, %p42_p0  ;;  %p163_p7 = scmp.lt.s32.totalorder %s920_s21, 4 }
   0xa   : > { %p996_p6 = por %p156_p3, %p42_p0  ;;  %s922_s27 = smov [#allocation5]  }
   0xb   : > { %s1203_s24 = scalar_select %p991_p4, 1, 0 }
   0xc   : > { %s1204_s25 = scalar_select %p996_p6, 1, 0 }
   0xd   : > { %p1001_p8 = pnand %p558_p5, %p163_p7  ;;  %s175_s28 = sshll.u32 %s922_s27, 4  ;;  %s176_s28 = int_to_ptr.vmem [resolvable:$true] %s175_s28 }
   0xe   : > { %s923_s30 = smov [#allocation7]   ;;  %s764_s9 = scalar_lea.hbm %s1195_s1, 1024 }
   0xf   : > { %s1205_s26 = scalar_select %p1001_p8, 1, 0 }
  0x10   : > { %p704_p9 = pneg %p1001_p8  ;;  %s191_s6 = sshll.u32 %s923_s30, 4  ;;  %s1013_s6 = int_to_ptr.vmem [resolvable:$true] %s191_s6 }
  0x11   : > { %p765_p11 = scmp.ne.s32.totalorder %s1195_s1, %s764_s9  ;;  %p771_p3 = scmp.lt.u32.totalorder %s764_s9, %s1195_s1 }
  0x12   : > { %p1009_p10 = pnand %p704_p9, %p1200_p1 }
  0x14   : > { %p766_p12 = pneg %p1009_p10 }
  0x16   : > { %p767_p13 = pnand %p766_p12, %p765_p11 }
  0x18   : > { %p768_p0 = pneg %p767_p13 }
  0x1a   : > { %p773_p5 = pnand %p771_p3, %p768_p0 }
  0x1c   : > { %776 = shalt.err (!%p773_p5)
}
  0x1d   : > { %s777_s14 = scalar_lea.vmem %s176_s28, 1024  ;;  %p785_p2 = scmp.lt.s32.totalorder %s176_s28, %s176_s28 }
  0x1e   : > { %p778_p7 = scmp.ne.s32.totalorder %s176_s28, %s777_s14  ;;  %p786_p6 = scmp.lt.s32.totalorder %s777_s14, %s777_s14 }
  0x20   : > { %p780_p9 = pnand %p778_p7, %p766_p12  ;;  %p787_p4 = por %p786_p6, %p785_p2 }
  0x22   : > { %p781_p1 = pneg %p780_p9 }
  0x24   : > { %p788_p8 = pnand %p787_p4, %p781_p1 }
  0x26   : > { %791 = shalt.err (!%p788_p8)
}
  0x27   : > { %s924_s15 = smov 128   ;;  %s925_s16 = smov 8  }
  0x28   : > { %707 = dma.hbm_to_vmem [thread:$0]  (!%p1009_p10), %s1195_s1, 1024, %s176_s28, [#allocation6], %s924_s15, %s924_s15, %s925_s16  }
  0x29   : > { %s792_s7 = scalar_lea.hbm %s1197_s3, 2048 }
  0x2a   : > { %p793_p11 = scmp.ne.s32.totalorder %s1197_s3, %s792_s7  ;;  %p799_p4 = scmp.lt.u32.totalorder %s792_s7, %s1197_s3 }
  0x2c   : > { %p795_p1 = pnand %p793_p11, %p766_p12 }
  0x2e   : > { %p796_p2 = pneg %p795_p1 }
  0x30   : > { %p801_p6 = pnand %p799_p4, %p796_p2 }
  0x32   : > { %804 = shalt.err (!%p801_p6)
}
  0x33   : > { %s805_s28 = scalar_lea.vmem %s1013_s6, 2048  ;;  %p813_p3 = scmp.lt.s32.totalorder %s1013_s6, %s1013_s6 }
  0x34   : > { %p806_p8 = scmp.ne.s32.totalorder %s1013_s6, %s805_s28  ;;  %p814_p5 = scmp.lt.s32.totalorder %s805_s28, %s805_s28 }
  0x36   : > { %p808_p13 = pnand %p806_p8, %p766_p12  ;;  %p815_p7 = por %p814_p5, %p813_p3 }
  0x38   : > { %p809_p0 = pneg %p808_p13 }
  0x3a   : > { %p816_p9 = pnand %p815_p7, %p809_p0 }
  0x3c   : > { %819 = shalt.err (!%p816_p9)
}
  0x3d   : > { %710 = dma.hbm_to_vmem [thread:$0]  (!%p1009_p10), %s1197_s3, 2048, %s1013_s6, [#allocation6], %s924_s15, %s924_s15, %s925_s16  }
  0x3e   : > { %s1063_s14 = sadd.s32 1, %s920_s21   ;;  %s29_s29 = sadd.s32 1, %s916_s20 }
  0x3f   : > { %s26_s17 = ssub.s32 %s920_s21, %s1063_s14  ;;  %p36_p12 = scmp.ne.s32.totalorder %s916_s20, %s912_s19 }
  0x40   : > { %p27_p11 = scmp.eq.s32.totalorder %s26_s17, 0  ;;  %p37_p1 = scmp.eq.s32.totalorder %s920_s21, 0 }
  0x41   : > { %p1207_p2 = scmp.eq.s32.totalorder %s982_s22, 2  ;;  %p721_p6 = scmp.lt.s32.totalorder %s920_s21, 3 }
  0x42   : > { %s1079_s27 = scalar_select %p27_p11, %s916_s20, %s29_s29  }
  0x43   : > { %p1073_p4 = por %p1207_p2, %p36_p12  ;;  %p38_p8 = por %p37_p1, %p36_p12 }
  0x44   : > { %s208_s30 = sand.u32 1, %s916_s20   ;;  %s563_s6 = sshll.u32 %s920_s21, 7 }
  0x45   : > { %s562_s7 = sshll.u32 %s208_s30, 3  ;;  %s1086_s8 = scalar_lea.hbm %s1194_s0, %s563_s6 }
  0x46   : > { %s212_s9 = scalar_lea.vmem [#allocation2], %s562_s7  ;;  %p1090_p10 = pnand %p721_p6, %p38_p8 }
  0x47   : > { %s219_s10 = sshll.u32 %s212_s9, 4  ;;  %s209_s28 = scalar_lea.sflag [#allocation3], %s208_s30  ;;  %s1088_s10 = int_to_ptr.vmem [resolvable:$true] %s219_s10 }
  0x48   : > { %s820_s12 = scalar_lea.hbm %s1086_s8, 128  ;;  %p822_p0 = pneg %p1090_p10 }
  0x49   : > { %p821_p13 = scmp.ne.s32.totalorder %s1086_s8, %s820_s12  ;;  %s825_s17 = scalar_lea.hbm %s1194_s0, 384 }
  0x4a   : > { %p826_p7 = scmp.lt.u32.totalorder %s1086_s8, %s1194_s0  ;;  %p827_p9 = scmp.lt.u32.totalorder %s825_s17, %s820_s12 }
  0x4b   : > { %p823_p3 = pnand %p822_p0, %p821_p13  ;;  %p829_p11 = scmp.lt.u32.totalorder %s820_s12, %s1086_s8 }
  0x4c   : > { %p828_p12 = por %p827_p9, %p826_p7 }
  0x4d   : > { %p824_p5 = pneg %p823_p3 }
  0x4e   : > { %p830_p1 = por %p829_p11, %p828_p12 }
  0x50   : > { %p831_p2 = pnand %p830_p1, %p824_p5 }
  0x52   : > { %834 = shalt.err (!%p831_p2)
}
  0x53   : > { %s835_s30 = scalar_lea.vmem %s1088_s10, 128  ;;  %s926_s15 = smov [#allocation2]  }
  0x54   : > { %p836_p6 = scmp.ne.s32.totalorder %s1088_s10, %s835_s30  ;;  %s840_s16 = sshll.u32 %s926_s15, 4  ;;  %s841_s16 = int_to_ptr.vmem [resolvable:$false] %s840_s16 }
  0x55   : > { %s842_s9 = scalar_lea.vmem %s841_s16, 256  ;;  %p843_p3 = scmp.lt.s32.totalorder %s1088_s10, %s841_s16 }
  0x56   : > { %p838_p8 = pnand %p836_p6, %p822_p0  ;;  %p844_p7 = scmp.lt.s32.totalorder %s842_s9, %s835_s30 }
  0x58   : > { %p839_p13 = pneg %p838_p8  ;;  %p845_p9 = por %p844_p7, %p843_p3 }
  0x5a   : > { %p846_p12 = pnand %p845_p9, %p839_p13 }
  0x5c   : > { %849 = shalt.err (!%p846_p12)
}
  0x5d   : > { %714 = dma.hbm_to_vmem [thread:$0]  (!%p1090_p10), %s1086_s8, 128, %s1088_s10, %s209_s28  }
  0x5e   : > { %p1210_p5 = scmp.ne.s32.totalorder %s1205_s26, 0 }
  0x5f   : > { %s1122_s12 = sand.u32 (!%p1210_p5), 1, %s912_s19   ;;  %p1211_p0 = scmp.ne.s32.totalorder (!%p1210_p5), %s1203_s24, 0 }
  0x60   : > { %228 = sbr.rel (%p1210_p5) target bundleno = 569 (0x239), region = 40  ;;  %s565_s13 = sshll.u32 (!%p1210_p5), %s1122_s12, 3 }
  0x61   : > { %s231_s29 = scalar_lea.sflag (!%p1210_p5), [#allocation3], %s1122_s12  ;;  %s1128_s17 = scalar_lea.vmem (!%p1210_p5), [#allocation2], %s565_s13 }
  0x67   : > { %895 = dma.done.wait (%p1211_p0), %s231_s29, 128  }
  0x68   : > { %897 = vsyncadd (%p1211_p0), %s231_s29, 4294967168  ;;  %p1212_p10 = scmp.eq.s32.totalorder %s982_s22, 0 }
  0x6a   : > { %899 = dma.done.wait (%p1212_p10), [#allocation6], 3072   ;;  %p1213_p11 = pmov %p1212_p10 }
  0x6b   : > { %v927_v0 = vmov 0.0|0.0   ;;  %vm928_vm0 = vmmov 0   ;;  %v929_v1 = vmov 0.0   ;;  %v270_v2 = vld [vmem:[#allocation5] sm:$0xff]  ;;  %v271_v3 = vld [vmem:[#allocation5 + $0x8] sm:$0xff]  ;;  %v272_v4 = vld [vmem:[#allocation5 + $0x10] sm:$0xff] }
  0x6c   : > { %901 = vsyncadd (%p1213_p11), [#allocation6], 4294964224  ;;  %656 = vmatprep.subr.bf16.mxu0 %v927_v0  ;;  %618 = vmatprep.mubr.msk.f32.mxu0 %vm928_vm0, %v929_v1  ;;  %v657_v5 = vpack.c.bf16 %v271_v3, %v270_v2  ;;  %v273_v6 = vld [vmem:[#allocation5 + $0x18] sm:$0xff]  ;;  %v360_v8 = vld [vmem:[#allocation7] sm:$0xff]  ;;  %vm285_vm1 = vcmask 523264   ;;  %s573_s11 = sshll.u32 %s982_s22, 7 }
  0x6d   : > { %668 = vmatprep.subr.bf16.mxu1 %v927_v0  ;;  %653 = vmatprep.mubr.msk.f32.mxu1 %vm928_vm0, %v929_v1  ;;  %v660_v7 = vpack.c.bf16 %v273_v6, %v272_v4  ;;  %v361_v9 = vld [vmem:[#allocation7 + $0x8] sm:$0xff]  ;;  %v362_v10 = vld [vmem:[#allocation7 + $0x10] sm:$0xff]  ;;  %v274_v11 = vld [vmem:[#allocation5 + $0x20] sm:$0xff]  ;;  %s268_s28 = scalar_lea.vmem [#allocation8], %s565_s13  ;;  %s1151_s15 = scalar_lea.hbm %s1199_s5, %s573_s11 }
  0x6e   : > { %658 = vmatpush3.bf16.msra.mxu0 %v657_v5  ;;  %v275_v12 = vld [vmem:[#allocation5 + $0x28] sm:$0xff]  ;;  %v669_v13 = vpack.c.bf16 %v361_v9, %v360_v8  ;;  %v363_v14 = vld [vmem:[#allocation7 + $0x18] sm:$0xff]  ;;  %v364_v17 = vld [vmem:[#allocation7 + $0x20] sm:$0xff]  ;;  %s468_s7 = sshll.u32 %s268_s28, 4  ;;  %s455_s16 = scalar_lea.sflag [#allocation4], %s1122_s12  ;;  %s1153_s7 = int_to_ptr.vmem [resolvable:$true] %s468_s7 }
  0x6f   : > { %659 = vmatprep.subr.bf16.mxu0 %v927_v0  ;;  %v672_v15 = vpack.c.bf16 %v363_v14, %v362_v10  ;;  %v663_v16 = vpack.c.bf16 %v275_v12, %v274_v11  ;;  %v365_v18 = vld [vmem:[#allocation7 + $0x28] sm:$0xff]  ;;  %v276_v19 = vld [vmem:[#allocation5 + $0x30] sm:$0xff]  ;;  %v277_v20 = vld [vmem:[#allocation5 + $0x38] sm:$0xff]  ;;  %s850_s9 = scalar_lea.vmem %s1153_s7, 128  ;;  %s930_s22 = smov [#allocation8]  }
  0x70   : > { %670 = vmatpush3.bf16.msra.mxu1 %v669_v13  ;;  %v675_v21 = vpack.c.bf16 %v365_v18, %v364_v17  ;;  %v666_v22 = vpack.c.bf16 %v277_v20, %v276_v19  ;;  %v366_v23 = vld [vmem:[#allocation7 + $0x30] sm:$0xff]  ;;  %v367_v24 = vld [vmem:[#allocation7 + $0x38] sm:$0xff]  ;;  %v368_v27 = vld [vmem:[#allocation7 + $0x40] sm:$0xff]  ;;  %p851_p1 = scmp.ne.s32.totalorder %s1153_s7, %s850_s9  ;;  %s854_s13 = sshll.u32 %s930_s22, 4  ;;  %s855_s13 = int_to_ptr.vmem [resolvable:$false] %s854_s13 }
  0x71   : > { %671 = vmatprep.subr.bf16.mxu1 %v927_v0  ;;  %v678_v25 = vpack.c.bf16 %v367_v24, %v366_v23  ;;  %v269_v26 = vld [vmem:[%s1128_s17] sm:$0xff]  ;;  %v369_v28 = vld [vmem:[#allocation7 + $0x48] sm:$0xff]  ;;  %v372_v33 = vld [vmem:[#allocation7 + $0x60] sm:$0xff]  ;;  %s856_s29 = scalar_lea.vmem %s855_s13, 256  ;;  %p857_p8 = scmp.lt.s32.totalorder %s1153_s7, %s855_s13 }
  0x72   : > { %661 = vmatpush3.bf16.msra.mxu0 %v660_v7  ;;  %v681_v29 = vpack.c.bf16 %v369_v28, %v368_v27  ;;  %v370_v30 = vld [vmem:[#allocation7 + $0x50] sm:$0xff]  ;;  %v371_v31 = vld [vmem:[#allocation7 + $0x58] sm:$0xff]  ;;  %v373_v34 = vld [vmem:[#allocation7 + $0x68] sm:$0xff]  ;;  %p852_p2 = pnand %p851_p1, %p1073_p4  ;;  %p858_p13 = scmp.lt.s32.totalorder %s856_s29, %s850_s9 }
  0x73   : > { %662 = vmatprep.subr.bf16.mxu0 %v927_v0  ;;  %v684_v32 = vpack.c.bf16 %v371_v31, %v370_v30  ;;  %v687_v35 = vpack.c.bf16 %v373_v34, %v372_v33  ;;  %v374_v36 = vld [vmem:[#allocation7 + $0x70] sm:$0xff]  ;;  %v375_v37 = vld [vmem:[#allocation7 + $0x78] sm:$0xff] }
  0x74   : > { %673 = vmatpush3.bf16.msra.mxu1 %v672_v15  ;;  %v690_v38 = vpack.c.bf16 %v375_v37, %v374_v36  ;;  %v569_v39 = vld [vmem:[%s1196_s2] ss:$0 sm:$0xff]  ;;  %p853_p6 = pneg %p852_p2  ;;  %p859_p3 = por %p858_p13, %p857_p8 }
  0x75   : > { %674 = vmatprep.subr.bf16.mxu1 %v927_v0  ;;  %v571_v44 = vld [vmem:[%s1198_s4] ss:$0 sm:$0xff] }
  0x76   : > { %664 = vmatpush3.bf16.msra.mxu0 %v663_v16  ;;  %p860_p7 = pnand %p859_p3, %p853_p6 }
  0x77   : > { %665 = vmatprep.subr.bf16.mxu0 %v927_v0 }
  0x78   : > { %676 = vmatpush3.bf16.msra.mxu1 %v675_v21 }
  0x79   : > { %677 = vmatprep.subr.bf16.mxu1 %v927_v0 }
  0x7a   : > { %667 = vmatpush3.bf16.msra.mxu0 %v666_v22 }
  0x7c   : > { %679 = vmatpush3.bf16.msra.mxu1 %v678_v25 }
  0x7d   : > { %619 = vmatmul.mubr.msk.f32.vlgmr.msra.gmra.mrb[0].mxu0 %vm285_vm1, %v269_v26  ;;  %680 = vmatprep.subr.bf16.mxu1 %v927_v0 }
  0x80   : > { %682 = vmatpush3.bf16.msra.mxu1 %v681_v29 }
  0x81   : > { %683 = vmatprep.subr.bf16.mxu1 %v927_v0 }
  0x84   : > { %685 = vmatpush3.bf16.msra.mxu1 %v684_v32 }
  0x85   : > { %686 = vmatprep.subr.bf16.mxu1 %v927_v0 }
  0x88   : > { %688 = vmatpush3.bf16.msra.mxu1 %v687_v35 }
  0x89   : > { %689 = vmatprep.subr.bf16.mxu1 %v927_v0 }
  0x8c   : > { %691 = vmatpush3.bf16.msra.mxu1 %v690_v38 }
 0x150   : > { %v355_v40 = vpop.f32.mrb[0].mxu0 }
 0x151   : > { %v356_v41 = vadd.f32 %v569_v39, %v355_v40  ;;  %v620_v42 = vpop.f32.mrb[1].mxu0 }
 0x153   : > { %v359_v43 = vmax.f32 %v356_v41, 0.0 }
 0x155   : > { %654 = vmatmul.mubr.f32.vlgmr.msra.gmra.mrb[0].mxu1 %v359_v43 }
 0x228   : > { %v449_v45 = vpop.f32.mrb[0].mxu1 }
 0x229   : > { %v450_v46 = vadd.f32 %v571_v44, %v449_v45  ;;  %v655_v47 = vpop.f32.mrb[1].mxu1 }
 0x22b   : > { %453 = vst [vmem:[%s268_s28] sm:$0xff] %v450_v46 }
 0x22c   : > { %863 = shalt.err (!%p860_p7)
}
 0x22d   : > { %s864_s12 = scalar_lea.hbm %s1151_s15, 128  ;;  %s868_s26 = scalar_lea.hbm %s1199_s5, 384 }
 0x22e   : > { %p865_p9 = scmp.ne.s32.totalorder %s1151_s15, %s864_s12  ;;  %p869_p0 = scmp.lt.u32.totalorder %s1151_s15, %s1199_s5 }
 0x22f   : > { %p870_p10 = scmp.lt.u32.totalorder %s868_s26, %s864_s12  ;;  %p872_p1 = scmp.lt.u32.totalorder %s864_s12, %s1151_s15 }
 0x230   : > { %p866_p12 = pnand %p865_p9, %p1073_p4 }
 0x231   : > { %p871_p11 = por %p870_p10, %p869_p0 }
 0x232   : > { %p867_p5 = pneg %p866_p12 }
 0x233   : > { %p873_p2 = por %p872_p1, %p871_p11 }
 0x235   : > { %p874_p6 = pnand %p873_p2, %p867_p5 }
 0x237   : > { %877 = shalt.err (!%p874_p6)
}
 0x238   : > { %702 = dma.vmem_to_hbm [thread:$0]  (%p1073_p4), %s1153_s7, 128, %s1151_s15, %s455_s16  }
 0x239 PF: > { %p724_p8 = scmp.ge.s32.totalorder %s920_s21, 2  ;;  %s480_s11 = sand.u32 1, %s908_s18  }
 0x23a   : > { %p1214_p13 = scmp.ne.s32.totalorder %s1204_s25, 0  ;;  %s481_s28 = scalar_lea.sflag [#allocation4], %s480_s11 }
 0x23c   : > { %p716_p3 = pnand %p724_p8, %p1214_p13 }
 0x23e   : > { %903 = dma.done.wait (!%p716_p3), %s481_s28, 128  }
 0x23f   : > { %905 = vsyncadd (!%p716_p3), %s481_s28, 4294967168  ;;  %p19_p7 = scmp.ge.s32.totalorder %s1063_s14, 5   ;;  %s1215_s18 = smov %s912_s19 }
 0x240   : > { %s1216_s19 = smov %s916_s20  ;;  %s1217_s20 = smov %s1079_s27 }
 0x241   : > { %s1218_s21 = smov %s1063_s14  ;;  %21 = sbr.rel (!%p19_p7) target bundleno = 6 (0x6), region = 93 }
 0x248   :  { %486 = vsyncpa [#allocation3], 1 }
 0x249   :  { %488 = vsyncpa [#allocation3 + $0x1], 1 }
 0x24a   :  { %489 = vsyncpa [#allocation6], 1 }
 0x24b   :  { %490 = vsyncpa [#allocation4], 1 }
 0x24c   :  { %492 = vsyncpa [#allocation4 + $0x1], 1 }

</bundles_post_ra>
